<compile_context>
chip_gen: v7x
topology: tpu7x:2x2x1
jax: 0.10.0
libtpu: 0.0.40
codegen_flags: <defaults>
</compile_context>

<pallas_src>
import functools

import jax
import jax.numpy as jnp
from jax import lax
from jax.experimental import pallas as pl
from jax.experimental.pallas import tpu as pltpu

EPS = 1e-12  # F.normalize(p=1) clamp_min eps


# ---------------------------------------------------------------------------
# VMEM budgeting (generation-aware).
# ---------------------------------------------------------------------------
def _vmem_limit_bytes():
    try:
        cap = pltpu.get_tpu_info().vmem_capacity_bytes
    except Exception:
        cap = 64 * 1024 * 1024                       # conservative (v7x) fallback
    # Leave headroom for compiler-internal scratch / pipeline bookkeeping.
    return int(min(cap * 3 // 4, 112 * 1024 * 1024))


def _pick_gram_tiles(a, c, hw, block_budget):
    """Pick (bg, tk): samples-per-step and HW-chunk, honoring the (8,128) rule,
    the per-step VMEM block budget (double-buffered by Pallas), and keeping
    >=4 sample-grid steps when possible (megacore + pipelining)."""
    min_tk = 128 if hw % 128 == 0 else hw            # last dim: mult of 128 or full
    per_sample = c * min_tk * 4 + c * c * 4          # f32 feature chunk + f32 gram
    bg = max(1, block_budget // max(per_sample, 1))
    if a >= 4:
        bg = min(bg, a // 4)                         # >= 4 grid steps along samples
    elif a >= 2:
        bg = min(bg, a // 2)                         # >= 2 grid steps
    bg = max(bg, 1)
    while a % bg:
        bg -= 1
    # Enlarge the HW chunk within the remaining budget.
    if hw % 128 == 0:
        rem = max(block_budget - bg * c * c * 4, bg * c * 128 * 4)
        tk = min(hw, (rem // (bg * c * 4) // 128) * 128)
        tk = max(tk, 128)
        while hw % tk:
            tk -= 128
    else:
        # TODO(synk): if a non-128-multiple HW chunk ever blows the budget,
        # pad HW to a multiple of 128 in the wrapper instead.
        tk = hw
    return bg, tk


# ---------------------------------------------------------------------------
# Kernel 1: batched gram + L1 row normalization, with HW (K) reduction axis.
#   grid = (a // bg, hw // tk); feature block (bg, C, tk); output gram block
#   (bg, C, C) is the f32 accumulator (same block index across k).
#   Second output: per-sample squared Frobenius norm of the normalized gram.
# ---------------------------------------------------------------------------
def _gram_norm_kernel(feat_ref, gram_ref, norm_ref, *, inv_chw, precise):
    k = pl.program_id(1)

    f = feat_ref[...]                                    # (bg, C, tk) f32 from HBM
    if not precise:
        # bf16 MXU rate with f32 accumulation; no extra HBM traffic.
        f = f.astype(jnp.bfloat16)
    # TODO(synk): verify in the Mosaic dump that no per-step vxpose feeds the
    # 'gjk' operand (both operands contract over the lane dim).
    partial = jnp.einsum('gik,gjk->gij', f, f,
                         preferred_element_type=jnp.float32)     # (bg, C, C)

    @pl.when(k == 0)
    def _():
        gram_ref[...] = jnp.zeros_like(gram_ref)
    gram_ref[...] += partial

    @pl.when(k == pl.num_programs(1) - 1)
    def _():
        g = gram_ref[...] * jnp.float32(inv_chw)                 # torch: G.div(C*H*W)
        denom = jnp.maximum(jnp.sum(jnp.abs(g), axis=-1, keepdims=True),
                            jnp.float32(EPS))                    # L1 row norm
        g = g * pl.reciprocal(denom, approx=not precise)         # EUP, not VALU div
        gram_ref[...] = g
        norm_ref[...] = jnp.sum(jnp.sum(g * g, axis=-1, keepdims=True),
                                axis=-2, keepdims=True)          # (bg, 1, 1)


def gram_normalize(feat, *, precise=False):
    """feat: (a, C, HW) f32 -> (normalized grams (a,C,C) f32, sq-norms (a,1,1))."""
    a, c, hw = feat.shape
    limit = _vmem_limit_bytes()
    bg, tk = _pick_gram_tiles(a, c, hw, limit // 3)      # /3: room for 2x dbl-buffer
    kernel = functools.partial(_gram_norm_kernel,
                               inv_chw=1.0 / (c * hw), precise=precise)
    return pl.pallas_call(
        kernel,
        out_shape=(jax.ShapeDtypeStruct((a, c, c), jnp.float32),
                   jax.ShapeDtypeStruct((a, 1, 1), jnp.float32)),
        grid=(a // bg, hw // tk),
        in_specs=[pl.BlockSpec((bg, c, tk), lambda i, k: (i, 0, k))],
        out_specs=(pl.BlockSpec((bg, c, c), lambda i, k: (i, 0, 0)),
                   pl.BlockSpec((bg, 1, 1), lambda i, k: (i, 0, 0))),
        compiler_params=pltpu.CompilerParams(
            dimension_semantics=("parallel", "arbitrary"),
            vmem_limit_bytes=limit),
    )(feat)


# ---------------------------------------------------------------------------
# Kernel 2: contrastive softmin cross-entropy, Gb groups per step.
#   mse[g,i,j] = 0.1 * (||fs_i||^2 + ||fc_j||^2 - 2 fs_i . fc_j)  (MXU cross term)
#   out[g]     = sum_i ( logsumexp_j(-mse[g,i,:]) - (-mse[g,i,i]) )
# Squared norms are precomputed by kernel 1 and passed in (tiny), so no fc*fc /
# fs*fs streaming passes here.
# ---------------------------------------------------------------------------
def _contrastive_kernel(fc_ref, fs_ref, fcn_ref, fsn_ref, out_ref):
    fc = fc_ref[...]                                     # (Gb, n, CC) content grams
    fs = fs_ref[...]                                     # (Gb, n, CC) gathered style
    # Cross term kept in f32: expanded-square cancellation is the accuracy risk
    # here and this kernel is vld-bound, not MXU-bound.
    cross = jnp.einsum('gik,gjk->gij', fs, fc,
                       preferred_element_type=jnp.float32)        # (Gb, n, n)

    mse = (fsn_ref[...] + fcn_ref[...] - 2.0 * cross) * jnp.float32(0.1)
    logits = -mse                                        # softmin(x) == softmax(-x)
    m = jnp.max(logits, axis=-1, keepdims=True)
    lse = jnp.log(jnp.sum(jnp.exp(logits - m), axis=-1, keepdims=True)) + m

    row = lax.broadcasted_iota(jnp.int32, logits.shape, 1)
    col = lax.broadcasted_iota(jnp.int32, logits.shape, 2)
    diag = jnp.sum(jnp.where(row == col, logits, jnp.float32(0.0)),
                   axis=-1, keepdims=True)               # (Gb, n, 1) target logits
    out_ref[...] = jnp.sum(lse - diag, axis=1, keepdims=True)     # (Gb, 1, 1)


def contrastive_loss(fc, fs, fc_norm, fs_norm):
    """fc, fs: (b,n,CC); fc_norm: (b,1,n); fs_norm: (b,n,1) -> scalar mean NLL."""
    b, n, cc = fc.shape
    limit = _vmem_limit_bytes()
    per_group = 2 * n * cc * 4 + 8 * n + 4               # two gram blocks dominate
    gb = max(1, (limit // 3) // max(per_group, 1))
    if b >= 2:
        gb = min(gb, b // 2)                             # keep >= 2 grid steps
    gb = max(gb, 1)
    while b % gb:
        gb -= 1
    partial = pl.pallas_call(
        _contrastive_kernel,
        out_shape=jax.ShapeDtypeStruct((b, 1, 1), jnp.float32),
        grid=(b // gb,),
        in_specs=[pl.BlockSpec((gb, n, cc), lambda g: (g, 0, 0)),
                  pl.BlockSpec((gb, n, cc), lambda g: (g, 0, 0)),
                  pl.BlockSpec((gb, 1, n), lambda g: (g, 0, 0)),
                  pl.BlockSpec((gb, n, 1), lambda g: (g, 0, 0))],
        out_specs=pl.BlockSpec((gb, 1, 1), lambda g: (g, 0, 0)),
        compiler_params=pltpu.CompilerParams(
            dimension_semantics=("parallel",),
            vmem_limit_bytes=limit),
    )(fc, fs, fc_norm, fs_norm)
    return jnp.sum(partial) / jnp.float32(b * n)         # nll_loss mean reduction


# ---------------------------------------------------------------------------
# Forward wrapper (== Style_Contrastive.forward with default L_type='c1').
# ---------------------------------------------------------------------------
@functools.partial(jax.jit, static_argnames=("b", "n", "precise"))
def style_contrastive_c1(content, style, style_label, b, n, precise=False):
    a_c, c, h, w = content.shape
    a_s = style.shape[0]
    # No wrapper-level dtype cast: features are read exactly once, by kernel 1.
    feat_c = content.reshape(a_c, c, h * w)
    feat_s = style.reshape(a_s, c, h * w)

    gc, gc_norm = gram_normalize(feat_c, precise=precise)   # (a_c,C,C), (a_c,1,1)
    gs, gs_norm = gram_normalize(feat_s, precise=precise)   # (a_s,C,C), (a_s,1,1)

    cc = c * c
    lbl = style_label.astype(jnp.int32)
    fc = gc.reshape(b, n, cc)
    # Label gather of the tiny gram rows done once in XLA.
    # TODO(synk): for very large b*n*C*C, switch to a PrefetchScalarGridSpec
    # label-indexed index_map so kernel 2 reads selected gs rows from HBM
    # directly (saves one materialization of fs).
    fs = jnp.take(gs.reshape(a_s, cc), lbl, axis=0).reshape(b, n, cc)

    fc_norm = gc_norm.reshape(b, 1, n)                       # ||fc[bi, j]||^2
    fs_norm = jnp.take(gs_norm.reshape(a_s), lbl, axis=0).reshape(b, n, 1)
    return contrastive_loss(fc, fs, fc_norm, fs_norm)


# ---------------------------------------------------------------------------
# Pure-JAX reference for verification (HIGHEST precision grams).
# ---------------------------------------------------------------------------
def ref_style_contrastive_c1(content, style, style_label, b, n):
    def gram(x):
        a, c, h, w = x.shape
        f = x.reshape(a, c, h * w)
        g = jnp.einsum('aik,ajk->aij', f, f, precision=lax.Precision.HIGHEST)
        return g / (c * h * w)

    fc = gram(content)
    fs = gram(style)
    fc = fc / jnp.maximum(jnp.sum(jnp.abs(fc), -1, keepdims=True), EPS)
    fs = fs / jnp.maximum(jnp.sum(jnp.abs(fs), -1, keepdims=True), EPS)
    cc = fc.shape[-1] * fc.shape[-2]
    fc = fc.reshape(b, n, cc)
    fs = fs.reshape(-1, cc)[style_label].reshape(b, n, cc)
    diff = fs[:, :, None, :] - fc[:, None, :, :]             # (b, style i, content j, cc)
    mse = jnp.sum(diff ** 2, axis=-1) * 0.1                  # (b, n, n)
    logp = jax.nn.log_softmax(-mse, axis=-1)                 # log softmin
    diag = jnp.diagonal(logp, axis1=1, axis2=2)              # target == row index
    return -jnp.mean(diag)


if __name__ == "__main__":
    key = jax.random.PRNGKey(0)
    b, n = 2, 4                 # batch groups, styles per group
    C, H, W = 8, 16, 16
    a = b * n                   # total samples

    k1, k2, k3 = jax.random.split(key, 3)
    content = jax.random.normal(k1, (a, C, H, W), dtype=jnp.float32)
    style = jax.random.normal(k2, (a, C, H, W), dtype=jnp.float32)
    style_label = jax.random.randint(k3, (a,), 0, a, dtype=jnp.int32)

    ref = ref_style_contrastive_c1(content, style, style_label, b, n)

    # Precise path (f32 MXU passes, exact reciprocal): strict parity.
    loss_precise = jax.block_until_ready(
        style_contrastive_c1(content, style, style_label, b, n, precise=True))
    assert jnp.allclose(loss_precise, ref, rtol=5e-4, atol=1e-5), (loss_precise, ref)

    # Fast path (in-kernel bf16 matmul operands + approx reciprocal).
    loss_fast = jax.block_until_ready(
        style_contrastive_c1(content, style, style_label, b, n, precise=False))
    assert jnp.allclose(loss_fast, ref, rtol=2e-2, atol=2e-3), (loss_fast, ref)

    print("KERNEL_OK")
</pallas_src>

<mosaic_0001>
module attributes {stable_mosaic.version = 11 : i64} {
  func.func @_gram_norm_kernel(%arg0: i32, %arg1: i32, %arg2: memref<2x8x256xf32, #tpu.memory_space<vmem>>, %arg3: memref<2x8x8xf32, #tpu.memory_space<vmem>>, %arg4: memref<2x1x1xf32, #tpu.memory_space<vmem>>) attributes {dimension_semantics = [#tpu.dimension_semantics<parallel>, #tpu.dimension_semantics<arbitrary>], iteration_bounds = array<i64: 4, 1>, scalar_prefetch = 0 : i64, scratch_operands = 0 : i64, tpu.core_type = #tpu.core_type<tc>, window_params = [{transform_indices = @transform_0, window_bounds = array<i64: 2, 8, 256>}, {transform_indices = @transform_1, window_bounds = array<i64: 2, 8, 8>}, {transform_indices = @transform_2, window_bounds = array<i64: 2, 1, 1>}]} {
    %c0 = arith.constant 0 : index
    %c0_0 = arith.constant 0 : index
    %c0_1 = arith.constant 0 : index
    %0 = vector.load %arg2[%c0, %c0_0, %c0_1] : memref<2x8x256xf32, #tpu.memory_space<vmem>>, vector<2x8x256xf32>
    "tpu.trace_start"() <{level = 10 : i32, message = "gik,gjk->gij"}> : () -> ()
    %cst = arith.constant dense<0.000000e+00> : vector<2x8x8xf32>
    %1 = tpu.matmul %0, %0, %cst {dimension_numbers = #tpu.dot_dimension_numbers<[2], [2], [1], [1], [0, 0, 0, 1, 1, 1], [0], [0]>} : vector<2x8x256xf32>, vector<2x8x256xf32>, vector<2x8x8xf32> -> vector<2x8x8xf32>
    %c0_i32 = arith.constant 0 : i32
    "tpu.trace_stop"() : () -> ()
    %2 = arith.cmpi eq, %arg1, %c0_i32 : i32
    %3 = arith.extui %2 : i1 to i32
    %c0_i32_2 = arith.constant 0 : i32
    %4 = arith.cmpi ne, %3, %c0_i32_2 : i32
    scf.if %4 {
      %cst_11 = arith.constant 0.000000e+00 : f32
      %11 = vector.broadcast %cst_11 : f32 to vector<2x8x8xf32>
      %c0_12 = arith.constant 0 : index
      %c0_13 = arith.constant 0 : index
      %c0_14 = arith.constant 0 : index
      %12 = vector.load %arg3[%c0_12, %c0_13, %c0_14] : memref<2x8x8xf32, #tpu.memory_space<vmem>>, vector<2x8x8xf32>
      tpu.vector_store %arg3[%c0_12, %c0_13, %c0_14], %11 {strides = array<i32>} : memref<2x8x8xf32, #tpu.memory_space<vmem>>, vector<2x8x8xf32>,
    } else {
    }
    %c0_3 = arith.constant 0 : index
    %c0_4 = arith.constant 0 : index
    %c0_5 = arith.constant 0 : index
    %5 = vector.load %arg3[%c0_3, %c0_4, %c0_5] : memref<2x8x8xf32, #tpu.memory_space<vmem>>, vector<2x8x8xf32>
    %6 = arith.addf %5, %1 : vector<2x8x8xf32>
    %c0_6 = arith.constant 0 : index
    %c0_7 = arith.constant 0 : index
    %c0_8 = arith.constant 0 : index
    %7 = vector.load %arg3[%c0_6, %c0_7, %c0_8] : memref<2x8x8xf32, #tpu.memory_space<vmem>>, vector<2x8x8xf32>
    tpu.vector_store %arg3[%c0_6, %c0_7, %c0_8], %6 {strides = array<i32>} : memref<2x8x8xf32, #tpu.memory_space<vmem>>, vector<2x8x8xf32>,
    %c0_i32_9 = arith.constant 0 : i32
    %8 = arith.cmpi eq, %arg1, %c0_i32_9 : i32
    %9 = arith.extui %8 : i1 to i32
    %c0_i32_10 = arith.constant 0 : i32
    %10 = arith.cmpi ne, %9, %c0_i32_10 : i32
    scf.if %10 {
      %c0_11 = arith.constant 0 : index
      %c0_12 = arith.constant 0 : index
      %c0_13 = arith.constant 0 : index
      %11 = vector.load %arg3[%c0_11, %c0_12, %c0_13] : memref<2x8x8xf32, #tpu.memory_space<vmem>>, vector<2x8x8xf32>
      %cst_14 = arith.constant 4.8828125E-4 : f32
      %12 = vector.broadcast %cst_14 : f32 to vector<2x8x8xf32>
      %13 = arith.mulf %11, %12 : vector<2x8x8xf32>
      %14 = math.absf %13 : vector<2x8x8xf32>
      %cst_15 = arith.constant dense<0.000000e+00> : vector<2x8xf32>
      %15 = vector.multi_reduction <add>, %14, %cst_15 [2] : vector<2x8x8xf32> to vector<2x8xf32>
      %16 = vector.shape_cast %15 : vector<2x8xf32> to vector<2x8x1xf32>
      %cst_16 = arith.constant 9.99999996E-13 : f32
      %17 = vector.broadcast %cst_16 : f32 to vector<2x8x1xf32>
      %18 = arith.maximumf %16, %17 : vector<2x8x1xf32>
      %19 = tpu.reciprocal %18 : vector<2x8x1xf32> -> vector<2x8x1xf32>
      %20 = vector.broadcast %19 : vector<2x8x1xf32> to vector<2x8x8xf32>
      %21 = arith.mulf %13, %20 : vector<2x8x8xf32>
      %c0_17 = arith.constant 0 : index
      %c0_18 = arith.constant 0 : index
      %c0_19 = arith.constant 0 : index
      %22 = vector.load %arg3[%c0_17, %c0_18, %c0_19] : memref<2x8x8xf32, #tpu.memory_space<vmem>>, vector<2x8x8xf32>
      tpu.vector_store %arg3[%c0_17, %c0_18, %c0_19], %21 {strides = array<i32>} : memref<2x8x8xf32, #tpu.memory_space<vmem>>, vector<2x8x8xf32>,
      %23 = arith.mulf %21, %21 : vector<2x8x8xf32>
      %cst_20 = arith.constant dense<0.000000e+00> : vector<2x8xf32>
      %24 = vector.multi_reduction <add>, %23, %cst_20 [2] : vector<2x8x8xf32> to vector<2x8xf32>
      %25 = vector.shape_cast %24 : vector<2x8xf32> to vector<2x8x1xf32>
      %cst_21 = arith.constant dense<0.000000e+00> : vector<2x1xf32>
      %26 = vector.multi_reduction <add>, %25, %cst_21 [1] : vector<2x8x1xf32> to vector<2x1xf32>
      %27 = vector.shape_cast %26 : vector<2x1xf32> to vector<2x1x1xf32>
      %c0_22 = arith.constant 0 : index
      %c0_23 = arith.constant 0 : index
      %c0_24 = arith.constant 0 : index
      %28 = vector.load %arg4[%c0_22, %c0_23, %c0_24] : memref<2x1x1xf32, #tpu.memory_space<vmem>>, vector<2x1x1xf32>
      tpu.vector_store %arg4[%c0_22, %c0_23, %c0_24], %27 {strides = array<i32>} : memref<2x1x1xf32, #tpu.memory_space<vmem>>, vector<2x1x1xf32>,
    } else {
    }
    return
  }
  func.func @transform_0(%arg0: i32, %arg1: i32) -> (i32, i32, i32) {
    %c0_i32 = arith.constant 0 : i32
    %c0_i32_0 = arith.constant 0 : i32
    return %arg0, %c0_i32, %arg1 : i32, i32, i32
  }
  func.func @transform_1(%arg0: i32, %arg1: i32) -> (i32, i32, i32) {
    %c0_i32 = arith.constant 0 : i32
    %c0_i32_0 = arith.constant 0 : i32
    %c0_i32_1 = arith.constant 0 : i32
    return %arg0, %c0_i32, %c0_i32_0 : i32, i32, i32
  }
  func.func @transform_2(%arg0: i32, %arg1: i32) -> (i32, i32, i32) {
    %c0_i32 = arith.constant 0 : i32
    %c0_i32_0 = arith.constant 0 : i32
    %c0_i32_1 = arith.constant 0 : i32
    return %arg0, %c0_i32, %c0_i32_0 : i32, i32, i32
  }
}

module attributes {stable_mosaic.version = 11 : i64} {
  func.func @_contrastive_kernel(%arg0: i32, %arg1: memref<1x4x64xf32, #tpu.memory_space<vmem>>, %arg2: memref<1x4x64xf32, #tpu.memory_space<vmem>>, %arg3: memref<1x1x4xf32, #tpu.memory_space<vmem>>, %arg4: memref<1x4x1xf32, #tpu.memory_space<vmem>>, %arg5: memref<1x1x1xf32, #tpu.memory_space<vmem>>) attributes {dimension_semantics = [#tpu.dimension_semantics<parallel>], iteration_bounds = array<i64: 2>, scalar_prefetch = 0 : i64, scratch_operands = 0 : i64, tpu.core_type = #tpu.core_type<tc>, window_params = [{transform_indices = @transform_0, window_bounds = array<i64: 1, 4, 64>}, {transform_indices = @transform_1, window_bounds = array<i64: 1, 4, 64>}, {transform_indices = @transform_2, window_bounds = array<i64: 1, 1, 4>}, {transform_indices = @transform_3, window_bounds = array<i64: 1, 4, 1>}, {transform_indices = @transform_4, window_bounds = array<i64: 1, 1, 1>}]} {
    %c0 = arith.constant 0 : index
    %c0_0 = arith.constant 0 : index
    %c0_1 = arith.constant 0 : index
    %0 = vector.load %arg1[%c0, %c0_0, %c0_1] : memref<1x4x64xf32, #tpu.memory_space<vmem>>, vector<1x4x64xf32>
    %c0_2 = arith.constant 0 : index
    %c0_3 = arith.constant 0 : index
    %c0_4 = arith.constant 0 : index
    %1 = vector.load %arg2[%c0_2, %c0_3, %c0_4] : memref<1x4x64xf32, #tpu.memory_space<vmem>>, vector<1x4x64xf32>
    "tpu.trace_start"() <{level = 10 : i32, message = "gik,gjk->gij"}> : () -> ()
    %cst = arith.constant dense<0.000000e+00> : vector<1x4x4xf32>
    %2 = tpu.matmul %1, %0, %cst {dimension_numbers = #tpu.dot_dimension_numbers<[2], [2], [1], [1], [0, 0, 0, 1, 1, 1], [0], [0]>} : vector<1x4x64xf32>, vector<1x4x64xf32>, vector<1x4x4xf32> -> vector<1x4x4xf32>
    "tpu.trace_stop"() : () -> ()
    %c0_5 = arith.constant 0 : index
    %c0_6 = arith.constant 0 : index
    %c0_7 = arith.constant 0 : index
    %3 = vector.load %arg4[%c0_5, %c0_6, %c0_7] : memref<1x4x1xf32, #tpu.memory_space<vmem>>, vector<1x4x1xf32>
    %c0_8 = arith.constant 0 : index
    %c0_9 = arith.constant 0 : index
    %c0_10 = arith.constant 0 : index
    %4 = vector.load %arg3[%c0_8, %c0_9, %c0_10] : memref<1x1x4xf32, #tpu.memory_space<vmem>>, vector<1x1x4xf32>
    %5 = vector.broadcast %3 : vector<1x4x1xf32> to vector<1x4x4xf32>
    %6 = vector.broadcast %4 : vector<1x1x4xf32> to vector<1x4x4xf32>
    %7 = arith.addf %5, %6 : vector<1x4x4xf32>
    %cst_11 = arith.constant 2.000000e+00 : f32
    %8 = vector.broadcast %cst_11 : f32 to vector<1x4x4xf32>
    %9 = arith.mulf %8, %2 : vector<1x4x4xf32>
    %10 = arith.subf %7, %9 : vector<1x4x4xf32>
    %cst_12 = arith.constant 1.000000e-01 : f32
    %11 = vector.broadcast %cst_12 : f32 to vector<1x4x4xf32>
    %12 = arith.mulf %10, %11 : vector<1x4x4xf32>
    %cst_13 = arith.constant 0.000000e+00 : f32
    %13 = vector.broadcast %cst_13 : f32 to vector<1x4x4xf32>
    %14 = arith.subf %13, %12 : vector<1x4x4xf32>
    %cst_14 = arith.constant dense<0xFF800000> : vector<1x4xf32>
    %15 = vector.multi_reduction <maximumf>, %14, %cst_14 [2] : vector<1x4x4xf32> to vector<1x4xf32>
    %16 = vector.shape_cast %15 : vector<1x4xf32> to vector<1x4x1xf32>
    %17 = vector.broadcast %16 : vector<1x4x1xf32> to vector<1x4x4xf32>
    %18 = arith.subf %14, %17 : vector<1x4x4xf32>
    %19 = math.exp %18 : vector<1x4x4xf32>
    %cst_15 = arith.constant dense<0.000000e+00> : vector<1x4xf32>
    %20 = vector.multi_reduction <add>, %19, %cst_15 [2] : vector<1x4x4xf32> to vector<1x4xf32>
    %21 = vector.shape_cast %20 : vector<1x4xf32> to vector<1x4x1xf32>
    %22 = math.log %21 : vector<1x4x1xf32>
    %23 = arith.addf %22, %16 : vector<1x4x1xf32>
    %24 = tpu.iota {dimensions = array<i32: 1>} : vector<1x4x4xi32>
    %25 = tpu.iota {dimensions = array<i32: 2>} : vector<1x4x4xi32>
    %26 = arith.cmpi eq, %24, %25 : vector<1x4x4xi32>
    %cst_16 = arith.constant 0.000000e+00 : f32
    %27 = vector.broadcast %cst_16 : f32 to vector<1x4x4xf32>
    %28 = arith.select %26, %14, %27 : vector<1x4x4xi1>, vector<1x4x4xf32>
    %cst_17 = arith.constant dense<0.000000e+00> : vector<1x4xf32>
    %29 = vector.multi_reduction <add>, %28, %cst_17 [2] : vector<1x4x4xf32> to vector<1x4xf32>
    %30 = vector.shape_cast %29 : vector<1x4xf32> to vector<1x4x1xf32>
    %31 = arith.subf %23, %30 : vector<1x4x1xf32>
    %cst_18 = arith.constant dense<0.000000e+00> : vector<1x1xf32>
    %32 = vector.multi_reduction <add>, %31, %cst_18 [1] : vector<1x4x1xf32> to vector<1x1xf32>
    %33 = vector.shape_cast %32 : vector<1x1xf32> to vector<1x1x1xf32>
    %c0_19 = arith.constant 0 : index
    %c0_20 = arith.constant 0 : index
    %c0_21 = arith.constant 0 : index
    %34 = vector.load %arg5[%c0_19, %c0_20, %c0_21] : memref<1x1x1xf32, #tpu.memory_space<vmem>>, vector<1x1x1xf32>
    tpu.vector_store %arg5[%c0_19, %c0_20, %c0_21], %33 {strides = array<i32>} : memref<1x1x1xf32, #tpu.memory_space<vmem>>, vector<1x1x1xf32>,
    return
  }
  func.func @transform_0(%arg0: i32) -> (i32, i32, i32) {
    %c0_i32 = arith.constant 0 : i32
    %c0_i32_0 = arith.constant 0 : i32
    %c0_i32_1 = arith.constant 0 : i32
    return %arg0, %c0_i32, %c0_i32_0 : i32, i32, i32
  }
  func.func @transform_1(%arg0: i32) -> (i32, i32, i32) {
    %c0_i32 = arith.constant 0 : i32
    %c0_i32_0 = arith.constant 0 : i32
    %c0_i32_1 = arith.constant 0 : i32
    return %arg0, %c0_i32, %c0_i32_0 : i32, i32, i32
  }
  func.func @transform_2(%arg0: i32) -> (i32, i32, i32) {
    %c0_i32 = arith.constant 0 : i32
    %c0_i32_0 = arith.constant 0 : i32
    %c0_i32_1 = arith.constant 0 : i32
    return %arg0, %c0_i32, %c0_i32_0 : i32, i32, i32
  }
  func.func @transform_3(%arg0: i32) -> (i32, i32, i32) {
    %c0_i32 = arith.constant 0 : i32
    %c0_i32_0 = arith.constant 0 : i32
    %c0_i32_1 = arith.constant 0 : i32
    return %arg0, %c0_i32, %c0_i32_0 : i32, i32, i32
  }
  func.func @transform_4(%arg0: i32) -> (i32, i32, i32) {
    %c0_i32 = arith.constant 0 : i32
    %c0_i32_0 = arith.constant 0 : i32
    %c0_i32_1 = arith.constant 0 : i32
    return %arg0, %c0_i32, %c0_i32_0 : i32, i32, i32
  }
}

</mosaic_0001>

<bundles_post_ra>
// kernel: style_contrastive_c1.4
= control target key start
LH: loop header
LB: loop body
LE: loop exit
PB: predicated region body
PF: predicated region fallthrough
CT: control target
= control target key end

     0   :  { %s576_s9 = smov 0   ;;  %s578_s10 = smov 0   ;;  %s639_s0 = inlined_call_operand.vmem [shape: f32[8,8,256], index: 0, kind: input, shape index: {}]   ;;  %s640_s1 = inlined_call_operand.vmem [shape: f32[8,8,8], index: 1, kind: output, shape index: {0}]   ;;  %s641_s2 = inlined_call_operand.vmem [shape: f32[8,1,1], index: 2, kind: output, shape index: {1}]  }
   0x1   :  { %s580_s11 = smov 0  }
   0x2 LB: > { %s25_s12 = sadd.s32 1, %s554_s10  ;;  %p497_p0 = scmp.ge.s32.totalorder %s558_s11, 1  ;;  %s558_s11 = sphi %s580_s11, %s13_s11   ;;  %s554_s10 = sphi %s578_s10, %s643_s10   ;;  %s550_s9 = sphi %s576_s9, %s642_s9  }
   0x3   : > { %p27_p1 = scmp.ge.s32.totalorder %s25_s12, 4  ;;  %p136_p2 = scmp.lt.s32.totalorder %s558_s11, 5 }
   0x5   : > { %s645_s12 = smov (%p27_p1, %s25_s12), 0  ;;  %p137_p3 = pnand %p497_p0, %p136_p2 }
   0x6   : > { %s498_s13 = sshll.u32 (!%p137_p3), %s550_s9, 1  ;;  %vm338_vm0 = vcmask (!%p137_p3), 64512   ;;  %v560_v4 = vmov (!%p137_p3), 0.0   ;;  %vm391_vm1 = vcmask (!%p137_p3), 0  }
   0x7   : > { %140 = sbr.rel (%p137_p3) target bundleno = 568 (0x238), region = 24  ;;  %p169_p4 = scmp.lt.s32.totalorder (!%p137_p3), %s498_s13, 7 }
   0xe   : > { %s647_s13 = smov (!%p169_p4, %s498_s13), 7 }
   0xf   : > { %s506_s14 = sshll.u32 %s647_s13, 4  ;;  %s502_s18 = sshll.u32 %s647_s13, 3 }
  0x10   : > { %s176_s17 = scalar_lea.vmem %s639_s0, %s506_s14  ;;  %s604_s21 = scalar_lea.vmem %s640_s1, %s502_s18 }
  0x11   : > { %v191_v0 = vld [vmem:[%s176_s17 + $0x8] sm:$0xff]  ;;  %v193_v1 = vld [vmem:[%s176_s17 + $0x18] sm:$0xff]  ;;  %v190_v2 = vld [vmem:[%s176_s17] sm:$0xff]  ;;  %339 = vst.msk [vmem:[%s604_s21] sm:$0xff] %vm338_vm0, %v560_v4  ;;  %s188_s24 = scalar_lea.vmem %s641_s2, %s647_s13 }
  0x12   : > { %194 = vmatprep.subr.mxu0 %v191_v0  ;;  %264 = vmatprep.subr.mxu1 %v193_v1  ;;  %v192_v3 = vld [vmem:[%s176_s17 + $0x10] sm:$0xff]  ;;  %340 = vst.msk [vmem:[%s604_s21 + $0x8] sm:$0xff] %vm338_vm0, %v560_v4 }
  0x13   : > { %195 = vmatpush1.xpose.msra.mxu0 %v190_v2  ;;  %265 = vmatpush1.xpose.msra.mxu1 %v192_v3 }
  0x14   : > { %258 = vmatprep.mubr.f32.mxu0 %v191_v0  ;;  %328 = vmatprep.mubr.f32.mxu1 %v193_v1 }
  0x16   : > { %259 = vmatmul.mubr.f32.vlgmr.msra.gmra.mrb[0].mxu0 %v190_v2  ;;  %329 = vmatmul.mubr.f32.vlgmr.msra.gmra.mrb[0].mxu1 %v192_v3 }
  0x18   : > { %v341_v5 = vld [vmem:[%s604_s21] sm:$0xff] }
  0x19   : > { %v342_v6 = vld [vmem:[%s604_s21 + $0x8] sm:$0xff] }
  0xe9   : > { %v260_v7 = vpop.f32.mrb[0].mxu0  ;;  %v330_v8 = vpop.f32.mrb[0].mxu1 }
  0xea   : > { %v343_v9 = vadd.f32 %v341_v5, %v260_v7  ;;  %v344_v10 = vadd.f32 %v342_v6, %v330_v8  ;;  %v262_v11 = vpop.f32.mrb[1].mxu0  ;;  %v332_v12 = vpop.f32.mrb[1].mxu1 }
  0xec   : > { %346 = vst.msk [vmem:[%s604_s21] sm:$0xff] %vm338_vm0, %v343_v9  ;;  %347 = vst.msk [vmem:[%s604_s21 + $0x8] sm:$0xff] %vm338_vm0, %v344_v10 }
  0xf3   : > { %v351_v13 = vld [vmem:[%s604_s21] sm:$0xff]  ;;  %v352_v14 = vld [vmem:[%s604_s21 + $0x8] sm:$0xff] }
  0xf4   : > { %v353_v15 = vmul.f32 0.00048828125, %v351_v13  ;;  %v354_v16 = vmul.f32 0.00048828125, %v352_v14 }
  0xf6   : > { %v355_v17 = vand.u32 2147483647, %v353_v15  ;;  %v356_v19 = vand.u32 2147483647, %v354_v16 }
  0xf8   : > { %v357_v18 = vsel %vm338_vm0, %v355_v17, 0.0  ;;  %v360_v20 = vsel %vm338_vm0, %v356_v19, 0.0 }
  0xf9   : > { %358 = vadd.xlane.f32.xlu0 %v357_v18 }
  0xfd   : > { %361 = vadd.xlane.f32.xlu0 %v360_v20 }
 0x186   : > { %v359_v21 = vpop.xlane.xlu0 %358 }
 0x187   : > { %v363_v22 = vmax.f32 %v359_v21, 1e-12 }
 0x189   : > { %532 = vrcp.f32 %v363_v22 }
 0x18a   : > { %v362_v23 = vpop.xlane.xlu0 %361 }
 0x18b   : > { %v364_v24 = vmax.f32 %v362_v23, 1e-12 }
 0x18d   : > { %534 = vrcp.f32 %v364_v24 }
 0x193   : > { %v533_v25 = vpop.eup %532 }
 0x194   : > { %v367_v26 = vmul.f32 %v533_v25, %v353_v15 }
 0x196   : > { %v371_v27 = vmul.f32 %v367_v26, %v367_v26  ;;  %369 = vst.msk [vmem:[%s604_s21] sm:$0xff] %vm338_vm0, %v367_v26 }
 0x197   : > { %v535_v28 = vpop.eup %534 }
 0x198   : > { %v373_v29 = vsel %vm338_vm0, %v371_v27, 0.0  ;;  %v368_v30 = vmul.f32 %v535_v28, %v354_v16 }
 0x199   : > { %374 = vadd.xlane.f32.xlu1 %v373_v29 }
 0x19a   : > { %v372_v31 = vmul.f32 %v368_v30, %v368_v30  ;;  %370 = vst.msk [vmem:[%s604_s21 + $0x8] sm:$0xff] %vm338_vm0, %v368_v30 }
 0x19c   : > { %v376_v32 = vsel %vm338_vm0, %v372_v31, 0.0 }
 0x19d   : > { %377 = vadd.xlane.f32.xlu1 %v376_v32 }
 0x226   : > { %v375_v33 = vpop.xlane.xlu1 %374 }
 0x227   : > { %v379_v34 = vrot.slane %v375_v33, 4 }
 0x229   : > { %v380_v35 = vadd.f32 %v379_v34, %v375_v33 }
 0x22a   : > { %v378_v36 = vpop.xlane.xlu1 %377 }
 0x22b   : > { %v381_v37 = vrot.slane %v380_v35, 2  ;;  %v385_v38 = vrot.slane %v378_v36, 4 }
 0x22d   : > { %v382_v39 = vadd.f32 %v381_v37, %v380_v35  ;;  %v386_v40 = vadd.f32 %v385_v38, %v378_v36 }
 0x22f   : > { %v383_v41 = vrot.slane %v382_v39, 1  ;;  %v387_v42 = vrot.slane %v386_v40, 2 }
 0x231   : > { %v384_v43 = vadd.f32 %v383_v41, %v382_v39  ;;  %v388_v44 = vadd.f32 %v387_v42, %v386_v40 }
 0x233   : > { %392 = vst.msk [vmem:[%s188_s24] sm:$0x1] %vm391_vm1, %v384_v43  ;;  %v389_v45 = vrot.slane %v388_v44, 1 }
 0x235   : > { %v390_v46 = vadd.f32 %v389_v45, %v388_v44 }
 0x237   : > { %393 = vst.msk [vmem:[%s188_s24 + $0x1] sm:$0x1] %vm391_vm1, %v390_v46 }
 0x238 PF: > { %s13_s11 = sadd.s32 1, %s558_s11   ;;  %s642_s9 = smov %s554_s10 }
 0x239   : > { %p10_p5 = scmp.ge.s32.totalorder %s13_s11, 6   ;;  %s643_s10 = smov %s645_s12 }
 0x23b   :  { %12 = sbr.rel (!%p10_p5) target bundleno = 2 (0x2), region = 74 }

// kernel: style_contrastive_c1.5
= control target key start
LH: loop header
LB: loop body
LE: loop exit
PB: predicated region body
PF: predicated region fallthrough
CT: control target
= control target key end

     0   :  { %s521_s15 = smov 0   ;;  %s555_s0 = inlined_call_operand.vmem [shape: f32[2,4,64], index: 0, kind: input, shape index: {}]   ;;  %s556_s1 = inlined_call_operand.vmem [shape: f32[2,4,64], index: 1, kind: input, shape index: {}]   ;;  %s557_s2 = inlined_call_operand.vmem [shape: f32[2,1,4], index: 2, kind: input, shape index: {}]   ;;  %s558_s3 = inlined_call_operand.vmem [shape: f32[2,4,1], index: 3, kind: input, shape index: {}]   ;;  %s559_s4 = inlined_call_operand.vmem [shape: f32[2,1,1], index: 4, kind: output, shape index: {}]  }
   0x1 LB: > { %s449_s16 = sadd.s32 4294967295, %s491_s15   ;;  %p453_p0 = scmp.ge.s32.totalorder %s491_s15, 1  ;;  %s491_s15 = sphi %s521_s15, %s14_s15  }
   0x2   : > { %p187_p1 = scmp.lt.s32.totalorder %s491_s15, 3 }
   0x4   : > { %p188_p2 = pnand %p453_p0, %p187_p1 }
   0x5   : > { %p221_p3 = scmp.lt.s32.totalorder (!%p188_p2), %s449_s16, 1  ;;  %v493_v0 = vmov (!%p188_p2), 0.0   ;;  %vm494_vm0 = vmmov (!%p188_p2), 0   ;;  %v495_v1 = vmov (!%p188_p2), 0   ;;  %vm241_vm1 = vcmask (!%p188_p2), 523264  }
   0x6   : > { %191 = sbr.rel (%p188_p2) target bundleno = 572 (0x23c), region = 36  ;;  %464 = vmatprep.subr.mxu0 (!%p188_p2), %v493_v0  ;;  %466 = vmatprep.mubr.msk.f32.mxu0 (!%p188_p2), %vm494_vm0, %v493_v0  ;;  %vm336_vm2 = vcmask (!%p188_p2), 27648   ;;  %v349_v18 = vlaneseq (!%p188_p2)  ;;  %vm359_vm4 = vcmask (!%p188_p2), 1043456   ;;  %vm367_vm5 = vcmask (!%p188_p2), 0  }
   0x7   : > { %480 = vset.pattern.permute.xlu0 (!%p188_p2), %v495_v1 }
   0x8   : > { %v350_v19 = vshrl.u32 (!%p188_p2), %v349_v18, 7  ;;  %v352_v20 = vand.u32 (!%p188_p2), 127, %v349_v18 }
   0xa   : > { %vm353_vm3 = vcmp.eq.s32.totalorder (!%p188_p2), %v350_v19, %v352_v20 }
   0xd   : > { %s561_s16 = smov (!%p221_p3, %s449_s16), 1 }
   0xe   : > { %s454_s17 = sshll.u32 %s561_s16, 2  ;;  %s231_s29 = scalar_lea.vmem %s557_s2, %s561_s16 }
   0xf   : > { %s224_s20 = scalar_lea.vmem %s555_s0, %s454_s17  ;;  %s228_s23 = scalar_lea.vmem %s556_s1, %s454_s17  ;;  %v459_v5 = vld [vmem:[%s231_s29] ss:$0 sm:$0xff] }
  0x10   : > { %v239_v2 = vld [vmem:[%s224_s20] sm:$0xf]  ;;  %s235_s26 = scalar_lea.vmem %s558_s3, %s454_s17  ;;  %s238_s6 = scalar_lea.vmem %s559_s4, %s561_s16 }
  0x11   : > { %465 = vmatpush3.xpose.msk.msra.mxu0 %vm241_vm1, %v239_v2  ;;  %v240_v3 = vld [vmem:[%s228_s23] sm:$0xf] }
  0x12   : > { %v318_v4 = vld [vmem:[%s235_s26] sm:$0xf] }
  0x13   : > { %322 = vperm.xlu0 %480, %v318_v4  }
  0x14   : > { %467 = vmatmul.mubr.msk.f32.vlgmr.msra.gmra.mrb[0].mxu0 %vm241_vm1, %v240_v3 }
  0x92   : > { %v323_v6 = vpop.permute.xlu0 %322 }
  0x93   : > { %v331_v7 = vadd.f32 %v459_v5, %v323_v6 }
  0xe7   : > { %v314_v8 = vpop.f32.mrb[0].mxu0 }
  0xe8   : > { %v332_v9 = vmul.f32 2.0, %v314_v8  ;;  %v468_v10 = vpop.f32.mrb[1].mxu0 }
  0xea   : > { %v333_v11 = vsub.f32 %v331_v7, %v332_v9 }
  0xec   : > { %v334_v12 = vmul.f32 0.1, %v333_v11 }
  0xee   : > { %v335_v13 = vsub.f32 0.0, %v334_v12 }
  0xf0   : > { %v337_v14 = vsel %vm336_vm2, %v335_v13, -inf  ;;  %v354_v23 = vsel %vm353_vm3, %v335_v13, 0.0 }
  0xf1   : > { %338 = vmax.xlane.f32.xlu0 %v337_v14  ;;  %v355_v24 = vsel %vm336_vm2, %v354_v23, 0.0 }
 0x17e   : > { %v339_v15 = vpop.xlane.xlu0 %338 }
 0x17f   : > { %v340_v16 = vsub.f32 %v335_v13, %v339_v15 }
 0x181   : > { %v341_v17 = vmul.f32 1.442695, %v340_v16 }
 0x183   : > { %481 = vpow2.f32 %v341_v17 }
 0x18d   : > { %v482_v21 = vpop.eup %481 }
 0x18e   : > { %v343_v22 = vsel %vm336_vm2, %v482_v21, 0.0 }
 0x18f   : > { %344 = vadd.xlane.f32.xlu1 %v343_v22 }
 0x193   : > { %356 = vadd.xlane.f32.xlu1 %v355_v24 }
 0x21c   : > { %v345_v25 = vpop.xlane.xlu1 %344 }
 0x21d   : > { %483 = vlog2.f32 %v345_v25 }
 0x220   : > { %v357_v29 = vpop.xlane.xlu1 %356 }
 0x227   : > { %v484_v26 = vpop.eup %483 }
 0x228   : > { %v347_v27 = vmul.f32 0.6931472, %v484_v26 }
 0x22a   : > { %v348_v28 = vadd.f32 %v347_v27, %v339_v15 }
 0x22c   : > { %v358_v30 = vsub.f32 %v348_v28, %v357_v29 }
 0x22e   : > { %v360_v31 = vsel %vm359_vm4, %v358_v30, 0.0 }
 0x22f   : > { %v361_v32 = vrot.slane %v360_v31, 4 }
 0x231   : > { %v362_v33 = vadd.f32 %v361_v32, %v360_v31 }
 0x233   : > { %v363_v34 = vrot.slane %v362_v33, 2 }
 0x235   : > { %v364_v35 = vadd.f32 %v363_v34, %v362_v33 }
 0x237   : > { %v365_v36 = vrot.slane %v364_v35, 1 }
 0x239   : > { %v366_v37 = vadd.f32 %v365_v36, %v364_v35 }
 0x23b   : > { %368 = vst.msk [vmem:[%s238_s6] sm:$0x1] %vm367_vm5, %v366_v37 }
 0x23c PF: > { %s14_s15 = sadd.s32 1, %s491_s15  }
 0x23d   : > { %p11_p4 = scmp.ge.s32.totalorder %s14_s15, 4  }
 0x23f   :  { %13 = sbr.rel (!%p11_p4) target bundleno = 1 (0x1), region = 75 }

</bundles_post_ra>
